<compile_context>
chip_gen: v5e
topology: v5e:2x2
jax: 0.10.0
libtpu: 0.0.40
codegen_flags: <defaults>
</compile_context>

<pallas_src>
import math

import jax
import jax.numpy as jnp
from jax import lax
from jax.experimental import pallas as pl
from jax.experimental.pallas import tpu as pltpu


def _default_vmem_limit_bytes():
    """Scoped-VMEM limit from the detected chip (48 MiB fallback ~ v7x)."""
    try:
        cap = int(getattr(pltpu.get_tpu_info(), "vmem_capacity_bytes"))
    except Exception:
        cap = 64 * 1024 * 1024
    return int(max(32 * 1024 * 1024, min(96 * 1024 * 1024, (cap * 3) // 4)))


def _make_conv_caps_kernel(K, tile_h, wo_p, kcin, cout):
    """Kernel over one (batch, row-tile) grid cell."""
    m = tile_h * wo_p

    def kernel(x_ref, w_ref, b_ref, gg_ref, out_ref):
        # x_ref : (Hp, Wo_p, K*Cin)  bf16  padded image of current batch with
        #                                  the kw taps pre-folded into lanes
        # w_ref : (K, K*Cin, Cout)   bf16  resident weights
        # b_ref : (1, Cout)          f32
        # gg_ref: (Cout, Cout)       bf16  block-diagonal capsule-group matrix
        # out_ref: (tile_h*Wo_p, Cout)     bf16
        h0 = pl.multiple_of(pl.program_id(1) * tile_h, tile_h)

        # conv = sum over K height taps of one fat matmul each
        # (contraction = K*Cin), kept as a value chain so there is no f32
        # accumulator read-modify-write through VMEM between taps.
        acc = None
        for kh in range(K):
            slab = x_ref[pl.ds(h0 + kh, tile_h), :, :].reshape(m, kcin)
            part = jnp.dot(slab, w_ref[kh], preferred_element_type=jnp.float32)
            acc = part if acc is None else acc + part

        y = acc + b_ref[...]                                   # bias, f32
        # squash over each capsule group of size No: one fused block-diagonal
        # matmul in bf16 (GG entries exactly 0/1), accumulated in f32.
        sumsq = jnp.dot((y * y).astype(gg_ref.dtype), gg_ref[...],
                        preferred_element_type=jnp.float32)
        scale = (sumsq
                 * pl.reciprocal(1.0 + sumsq, approx=True)
                 * lax.rsqrt(sumsq + 1e-8))
        out_ref[...] = (scale * y).astype(out_ref.dtype)

    return kernel


def conv2d_caps_forward(x, w, b, *, caps_num_out, kernel_size=3, stride=1,
                        pad=1, tile_h=None, compute_dtype=jnp.bfloat16,
                        out_dtype=jnp.bfloat16):
    """x: (B, Ci, Ni, H, W), w: (Cout, Cin, K, K), b: (Cout,).
    Returns (B, Co, No, Ho, Wo) f32, matching the PyTorch module."""
    B, Ci, Ni, H, W = x.shape
    Cin = Ci * Ni
    Cout, Cin_w, K, K2 = w.shape
    assert Cin_w == Cin and K == kernel_size and K2 == K
    # TODO(synk): stride > 1 needs strided window loads; module default is 1.
    assert stride == 1, "only stride=1 is implemented"
    no = caps_num_out
    co = Cout // no
    assert co * no == Cout

    Ho = H + 2 * pad - K + 1
    Wo = W + 2 * pad - K + 1

    # pad output width to a sublane-pack multiple so the in-kernel
    # (tile_h, Wo_p, K*Cin) -> (tile_h*Wo_p, K*Cin) reshape is a pure retiling
    wmul = 16 if compute_dtype == jnp.bfloat16 else 8
    Wo_p = ((Wo + wmul - 1) // wmul) * wmul
    Hp = H + 2 * pad
    Wp_ext = Wo_p + K - 1                       # >= W + 2*pad

    # row tile: largest divisor of Ho keeping M = tile_h * Wo_p <= 4096
    if tile_h is None:
        tile_h = 1
        for d in range(Ho, 0, -1):
            if Ho % d == 0 and d * Wo_p <= 4096:
                tile_h = d
                break
    assert Ho % tile_h == 0
    n_ht = Ho // tile_h

    # ---- glue (input-sized passes only; no 9x im2col in HBM) ----
    x4 = x.reshape(B, Cin, H, W).transpose(0, 2, 3, 1)          # NHWC
    xp = jnp.pad(x4, ((0, 0), (pad, pad), (pad, Wp_ext - W - pad), (0, 0)))
    xp = xp.astype(compute_dtype)                               # (B, Hp, Wp_ext, Cin)
    # fold the K width taps into the lane axis:
    # xe[b, h, wo, kw*Cin + c] = xp[b, h, wo + kw, c]
    xe = jnp.concatenate([xp[:, :, kw:kw + Wo_p, :] for kw in range(K)],
                         axis=-1)                               # (B, Hp, Wo_p, K*Cin)

    wmat = (w.transpose(2, 3, 1, 0)                             # (kh, kw, Cin, Cout)
             .reshape(K, K * Cin, Cout).astype(compute_dtype))
    bmat = b.reshape(1, Cout).astype(jnp.float32)
    # fused group matrix: GG[i, j] = 1 iff channels i, j share a capsule group
    GG = (jnp.arange(Cout)[:, None] // no
          == jnp.arange(Cout)[None, :] // no).astype(compute_dtype)

    kernel = _make_conv_caps_kernel(K, tile_h, Wo_p, K * Cin, Cout)

    flops = 2 * B * Ho * Wo_p * Cout * (Cin * K * K + Cout)
    bytes_accessed = (xe.size * xe.dtype.itemsize
                      + wmat.size * wmat.dtype.itemsize
                      + B * Ho * Wo_p * Cout * jnp.dtype(out_dtype).itemsize)

    out = pl.pallas_call(
        kernel,
        out_shape=jax.ShapeDtypeStruct((B, Ho * Wo_p, Cout), out_dtype),
        grid=(B, n_ht),
        in_specs=[
            # full (tap-folded) padded image of one batch, resident across
            # row tiles.
            # TODO(synk): for very large maps on v7x, single-buffer this
            # operand (pl.Buffered(1)) or switch to halo-row manual DMA.
            pl.BlockSpec((None, Hp, Wo_p, K * Cin), lambda bi, ht: (bi, 0, 0, 0)),
            # weights / bias / group matrix stay resident in VMEM
            pl.BlockSpec((K, K * Cin, Cout), lambda bi, ht: (0, 0, 0)),
            pl.BlockSpec((1, Cout), lambda bi, ht: (0, 0)),
            pl.BlockSpec((Cout, Cout), lambda bi, ht: (0, 0)),
        ],
        # NOTE: for production configs Cout >= 128 the store is lane-dense;
        # for small Cout (like the test's 16) a (B, Ho, Wo_p*Cout) out layout
        # would avoid masked partial stores.
        out_specs=pl.BlockSpec((None, tile_h * Wo_p, Cout),
                               lambda bi, ht: (bi, ht, 0)),
        compiler_params=pltpu.CompilerParams(
            dimension_semantics=("parallel", "parallel"),
            vmem_limit_bytes=_default_vmem_limit_bytes()),
        cost_estimate=pl.CostEstimate(
            flops=flops,
            transcendentals=2 * B * Ho * Wo_p * Cout,
            bytes_accessed=bytes_accessed),
    )(xe, wmat, bmat, GG)

    # back to the PyTorch module's output layout (B, Co, No, Ho, Wo), f32
    out = out.reshape(B, Ho, Wo_p, co, no)[:, :, :Wo]
    return out.transpose(0, 3, 4, 1, 2).astype(jnp.float32)


def _ref_forward(x, w, b, *, caps_num_out, pad=1, cast=None):
    """Pure-JAX reference of the PyTorch forward (conv2d + squash over dim=2)."""
    B, Ci, Ni, H, W = x.shape
    Cout = w.shape[0]
    no = caps_num_out
    co = Cout // no
    x4 = x.reshape(B, Ci * Ni, H, W)
    if cast is not None:  # match the kernel's operand precision
        x4 = x4.astype(cast).astype(jnp.float32)
        w = w.astype(cast).astype(jnp.float32)
    y = lax.conv_general_dilated(
        x4, w, window_strides=(1, 1), padding=[(pad, pad), (pad, pad)],
        dimension_numbers=("NCHW", "OIHW", "NCHW"))
    y = y + b[None, :, None, None]
    Ho, Wo = y.shape[-2:]
    y = y.reshape(B, co, no, Ho, Wo)
    sumsq = jnp.sum(y ** 2, axis=2, keepdims=True)
    scale = sumsq / (1.0 + sumsq) / jnp.sqrt(sumsq + 1e-8)
    return scale * y


if __name__ == "__main__":
    # small shapes consistent with the module
    B, Ci, Ni, H, W = 2, 4, 4, 16, 16       # conv_channel_in=4, caps_num_in=4
    Co, No = 4, 4                           # conv_channel_out=4, caps_num_out=4
    K = 3
    Cin, Cout = Ci * Ni, Co * No

    key = jax.random.PRNGKey(0)
    kx, kw_, kb = jax.random.split(key, 3)
    x = jax.random.normal(kx, (B, Ci, Ni, H, W), dtype=jnp.float32)
    fan_in = Cin * K * K
    bound = 1.0 / math.sqrt(fan_in)
    w = jax.random.uniform(kw_, (Cout, Cin, K, K), jnp.float32, -bound, bound)
    b = jax.random.uniform(kb, (Cout,), jnp.float32, -bound, bound)

    out = conv2d_caps_forward(x, w, b, caps_num_out=No, kernel_size=K,
                              stride=1, pad=1, tile_h=8)
    out = jax.block_until_ready(out)

    ref = _ref_forward(x, w, b, caps_num_out=No, pad=1, cast=jnp.bfloat16)
    assert out.shape == (B, Co, No, H, W), out.shape
    err = float(jnp.max(jnp.abs(out - ref)))
    # bf16 operands + bf16 squash matmul + approx reciprocal + bf16 output
    assert err < 2e-2, err
    print("KERNEL_OK")
</pallas_src>

<mosaic_0001>
module attributes {stable_mosaic.version = 11 : i64} {
  func.func @kernel(%arg0: i32, %arg1: i32, %arg2: memref<1x18x16x48xbf16, #tpu.memory_space<vmem>>, %arg3: memref<3x48x16xbf16, #tpu.memory_space<vmem>>, %arg4: memref<1x16xf32, #tpu.memory_space<vmem>>, %arg5: memref<16x16xbf16, #tpu.memory_space<vmem>>, %arg6: memref<1x128x16xbf16, #tpu.memory_space<vmem>>) attributes {dimension_semantics = [#tpu.dimension_semantics<parallel>, #tpu.dimension_semantics<parallel>], iteration_bounds = array<i64: 2, 2>, scalar_prefetch = 0 : i64, scratch_operands = 0 : i64, tpu.core_type = #tpu.core_type<tc>, window_params = [{transform_indices = @transform_0, window_bounds = array<i64: 1, 18, 16, 48>}, {pipeline_mode = #tpu.pipeline_mode<synchronous>, transform_indices = @transform_1, window_bounds = array<i64: 3, 48, 16>}, {pipeline_mode = #tpu.pipeline_mode<synchronous>, transform_indices = @transform_2, window_bounds = array<i64: 1, 16>}, {pipeline_mode = #tpu.pipeline_mode<synchronous>, transform_indices = @transform_3, window_bounds = array<i64: 16, 16>}, {transform_indices = @transform_4, window_bounds = array<i64: 1, 128, 16>}]} {
    %c8_i32 = arith.constant 8 : i32
    %0 = arith.muli %arg1, %c8_i32 : i32
    %1 = tpu.assume_multiple %0, 8 : i32
    %c0_i32 = arith.constant 0 : i32
    %2 = arith.addi %1, %c0_i32 : i32
    %c0 = arith.constant 0 : index
    %3 = arith.index_cast %2 : i32 to index
    %c0_0 = arith.constant 0 : index
    %c0_1 = arith.constant 0 : index
    %4 = vector.load %arg2[%c0, %3, %c0_0, %c0_1] : memref<1x18x16x48xbf16, #tpu.memory_space<vmem>>, vector<1x8x16x48xbf16>
    %5 = vector.shape_cast %4 : vector<1x8x16x48xbf16> to vector<8x16x48xbf16>
    %6 = vector.shape_cast %5 : vector<8x16x48xbf16> to vector<128x48xbf16>
    %c0_2 = arith.constant 0 : index
    %c0_3 = arith.constant 0 : index
    %c0_4 = arith.constant 0 : index
    %7 = vector.load %arg3[%c0_2, %c0_3, %c0_4] : memref<3x48x16xbf16, #tpu.memory_space<vmem>>, vector<1x48x16xbf16>
    %8 = vector.shape_cast %7 : vector<1x48x16xbf16> to vector<48x16xbf16>
    %cst = arith.constant dense<0.000000e+00> : vector<128x16xf32>
    %9 = tpu.matmul %6, %8, %cst {dimension_numbers = #tpu.dot_dimension_numbers<[1], [0], [0], [1], [0, 0, 1, 1], [], []>} : vector<128x48xbf16>, vector<48x16xbf16>, vector<128x16xf32> -> vector<128x16xf32>
    %c1_i32 = arith.constant 1 : i32
    %10 = arith.addi %1, %c1_i32 : i32
    %c0_5 = arith.constant 0 : index
    %11 = arith.index_cast %10 : i32 to index
    %c0_6 = arith.constant 0 : index
    %c0_7 = arith.constant 0 : index
    %12 = vector.load %arg2[%c0_5, %11, %c0_6, %c0_7] : memref<1x18x16x48xbf16, #tpu.memory_space<vmem>>, vector<1x8x16x48xbf16>
    %13 = vector.shape_cast %12 : vector<1x8x16x48xbf16> to vector<8x16x48xbf16>
    %14 = vector.shape_cast %13 : vector<8x16x48xbf16> to vector<128x48xbf16>
    %c1 = arith.constant 1 : index
    %c0_8 = arith.constant 0 : index
    %c0_9 = arith.constant 0 : index
    %15 = vector.load %arg3[%c1, %c0_8, %c0_9] : memref<3x48x16xbf16, #tpu.memory_space<vmem>>, vector<1x48x16xbf16>
    %16 = vector.shape_cast %15 : vector<1x48x16xbf16> to vector<48x16xbf16>
    %cst_10 = arith.constant dense<0.000000e+00> : vector<128x16xf32>
    %17 = tpu.matmul %14, %16, %cst_10 {dimension_numbers = #tpu.dot_dimension_numbers<[1], [0], [0], [1], [0, 0, 1, 1], [], []>} : vector<128x48xbf16>, vector<48x16xbf16>, vector<128x16xf32> -> vector<128x16xf32>
    %18 = arith.addf %9, %17 : vector<128x16xf32>
    %c2_i32 = arith.constant 2 : i32
    %19 = arith.addi %1, %c2_i32 : i32
    %c0_11 = arith.constant 0 : index
    %20 = arith.index_cast %19 : i32 to index
    %c0_12 = arith.constant 0 : index
    %c0_13 = arith.constant 0 : index
    %21 = vector.load %arg2[%c0_11, %20, %c0_12, %c0_13] : memref<1x18x16x48xbf16, #tpu.memory_space<vmem>>, vector<1x8x16x48xbf16>
    %22 = vector.shape_cast %21 : vector<1x8x16x48xbf16> to vector<8x16x48xbf16>
    %23 = vector.shape_cast %22 : vector<8x16x48xbf16> to vector<128x48xbf16>
    %c2 = arith.constant 2 : index
    %c0_14 = arith.constant 0 : index
    %c0_15 = arith.constant 0 : index
    %24 = vector.load %arg3[%c2, %c0_14, %c0_15] : memref<3x48x16xbf16, #tpu.memory_space<vmem>>, vector<1x48x16xbf16>
    %25 = vector.shape_cast %24 : vector<1x48x16xbf16> to vector<48x16xbf16>
    %cst_16 = arith.constant dense<0.000000e+00> : vector<128x16xf32>
    %26 = tpu.matmul %23, %25, %cst_16 {dimension_numbers = #tpu.dot_dimension_numbers<[1], [0], [0], [1], [0, 0, 1, 1], [], []>} : vector<128x48xbf16>, vector<48x16xbf16>, vector<128x16xf32> -> vector<128x16xf32>
    %27 = arith.addf %18, %26 : vector<128x16xf32>
    %c0_17 = arith.constant 0 : index
    %c0_18 = arith.constant 0 : index
    %28 = vector.load %arg4[%c0_17, %c0_18] : memref<1x16xf32, #tpu.memory_space<vmem>>, vector<1x16xf32>
    %29 = vector.broadcast %28 : vector<1x16xf32> to vector<128x16xf32>
    %30 = arith.addf %27, %29 : vector<128x16xf32>
    %31 = arith.mulf %30, %30 : vector<128x16xf32>
    %32 = arith.truncf %31 : vector<128x16xf32> to vector<128x16xbf16>
    %c0_19 = arith.constant 0 : index
    %c0_20 = arith.constant 0 : index
    %33 = vector.load %arg5[%c0_19, %c0_20] : memref<16x16xbf16, #tpu.memory_space<vmem>>, vector<16x16xbf16>
    %cst_21 = arith.constant dense<0.000000e+00> : vector<128x16xf32>
    %34 = tpu.matmul %32, %33, %cst_21 {dimension_numbers = #tpu.dot_dimension_numbers<[1], [0], [0], [1], [0, 0, 1, 1], [], []>} : vector<128x16xbf16>, vector<16x16xbf16>, vector<128x16xf32> -> vector<128x16xf32>
    %cst_22 = arith.constant 1.000000e+00 : f32
    %35 = vector.broadcast %cst_22 : f32 to vector<128x16xf32>
    %36 = arith.addf %35, %34 : vector<128x16xf32>
    %37 = tpu.reciprocal %36 {approx = true} : vector<128x16xf32> -> vector<128x16xf32>
    %38 = arith.mulf %34, %37 : vector<128x16xf32>
    %cst_23 = arith.constant 9.99999993E-9 : f32
    %39 = vector.broadcast %cst_23 : f32 to vector<128x16xf32>
    %40 = arith.addf %34, %39 : vector<128x16xf32>
    %41 = math.rsqrt %40 : vector<128x16xf32>
    %42 = arith.mulf %38, %41 : vector<128x16xf32>
    %43 = arith.mulf %42, %30 : vector<128x16xf32>
    %44 = arith.truncf %43 : vector<128x16xf32> to vector<128x16xbf16>
    %c0_24 = arith.constant 0 : index
    %c0_25 = arith.constant 0 : index
    %c0_26 = arith.constant 0 : index
    %45 = vector.load %arg6[%c0_24, %c0_25, %c0_26] : memref<1x128x16xbf16, #tpu.memory_space<vmem>>, vector<1x128x16xbf16>
    %46 = vector.shape_cast %45 : vector<1x128x16xbf16> to vector<128x16xbf16>
    %47 = vector.shape_cast %44 : vector<128x16xbf16> to vector<1x128x16xbf16>
    tpu.vector_store %arg6[%c0_24, %c0_25, %c0_26], %47 {strides = array<i32>} : memref<1x128x16xbf16, #tpu.memory_space<vmem>>, vector<1x128x16xbf16>,
    return
  }
  func.func @transform_0(%arg0: i32, %arg1: i32) -> (i32, i32, i32, i32) {
    %c0_i32 = arith.constant 0 : i32
    %c0_i32_0 = arith.constant 0 : i32
    %c0_i32_1 = arith.constant 0 : i32
    %c0_i32_2 = arith.constant 0 : i32
    return %arg0, %c0_i32, %c0_i32_0, %c0_i32_1 : i32, i32, i32, i32
  }
  func.func @transform_1(%arg0: i32, %arg1: i32) -> (i32, i32, i32) {
    %c0_i32 = arith.constant 0 : i32
    %c0_i32_0 = arith.constant 0 : i32
    %c0_i32_1 = arith.constant 0 : i32
    %c0_i32_2 = arith.constant 0 : i32
    return %c0_i32, %c0_i32_0, %c0_i32_1 : i32, i32, i32
  }
  func.func @transform_2(%arg0: i32, %arg1: i32) -> (i32, i32) {
    %c0_i32 = arith.constant 0 : i32
    %c0_i32_0 = arith.constant 0 : i32
    %c0_i32_1 = arith.constant 0 : i32
    return %c0_i32, %c0_i32_0 : i32, i32
  }
  func.func @transform_3(%arg0: i32, %arg1: i32) -> (i32, i32) {
    %c0_i32 = arith.constant 0 : i32
    %c0_i32_0 = arith.constant 0 : i32
    %c0_i32_1 = arith.constant 0 : i32
    return %c0_i32, %c0_i32_0 : i32, i32
  }
  func.func @transform_4(%arg0: i32, %arg1: i32) -> (i32, i32, i32) {
    %c0_i32 = arith.constant 0 : i32
    %c0_i32_0 = arith.constant 0 : i32
    return %arg0, %arg1, %c0_i32 : i32, i32, i32
  }
}

</mosaic_0001>

<bundles_post_ra>
// kernel: tpu_custom_call.1
= control target key start
LH: loop header
LB: loop body
LE: loop exit
PB: predicated region body
PF: predicated region fallthrough
CT: control target
= control target key end

     0   :  { %9 = vsyncpa [#allocation3], 0  ;;  %s2115_s0 = inlined_call_operand.hbm [shape: bf16[2,18,16,48], index: 0, kind: input, shape index: {}]   ;;  %s2116_s1 = inlined_call_operand.vmem [shape: bf16[3,48,16], index: 1, kind: input, shape index: {}]   ;;  %s2117_s2 = inlined_call_operand.vmem [shape: f32[1,16], index: 2, kind: input, shape index: {}]   ;;  %s2118_s3 = inlined_call_operand.vmem [shape: bf16[16,16], index: 3, kind: input, shape index: {}]   ;;  %s2119_s4 = inlined_call_operand.vmem [shape: bf16[2,256,16], index: 4, kind: output, shape index: {}]  }
   0x1   :  { %11 = vsyncpa [#allocation3 + $0x1], 0  ;;  %s1788_s15 = smov 0   ;;  %s1790_s16 = smov 0  }
   0x2   :  { %s1792_s17 = smov 0   ;;  %s1794_s18 = smov 0  }
   0x3   :  { %s1796_s19 = smov 0   ;;  %s1798_s20 = smov 0  }
   0x4   :  { %s1800_s21 = smov 0   ;;  %s1802_s22 = smov 0  }
   0x5 LB: > { %s1254_s23 = sadd.s32 4294967295, %s1759_s22   ;;  %s26_s24 = sadd.s32 1, %s1751_s20  ;;  %s1759_s22 = sphi %s1802_s22, %s17_s22   ;;  %s1755_s21 = sphi %s1800_s21, %s2127_s21   ;;  %s1751_s20 = sphi %s1798_s20, %s2126_s20   ;;  %s1747_s19 = sphi %s1796_s19, %s2125_s19   ;;  %s1743_s18 = sphi %s1794_s18, %s2124_s18   ;;  %s1739_s17 = sphi %s1792_s17, %s2123_s17   ;;  %s1735_s16 = sphi %s1790_s16, %s2122_s16   ;;  %s1731_s15 = sphi %s1788_s15, %s2121_s15  }
   0x6   : > { %p27_p0 = scmp.ge.s32.totalorder %s26_s24, 2  ;;  %s29_s25 = sadd.s32 1, %s1755_s21 }
   0x7   : > { %s36_s26 = sadd.s32 1, %s1739_s17  ;;  %p43_p1 = scmp.ne.s32.totalorder %s1739_s17, %s1735_s16 }
   0x8   : > { %s2129_s24 = smov (%p27_p0, %s26_s24), 0  ;;  %s2131_s25 = smov (!%p27_p0, %s29_s25), %s1755_s21 }
   0x9   : > { %p44_p2 = scmp.eq.s32.totalorder %s1759_s22, 0  ;;  %p49_p3 = scmp.ne.s32.totalorder %s1735_s16, %s1731_s15 }
   0xa   : > { %p31_p4 = scmp.ge.s32.totalorder %s2131_s25, 2  ;;  %p50_p5 = scmp.eq.s32.totalorder %s1254_s23, 0 }
   0xb   : > { %p45_p6 = por %p44_p2, %p43_p1  ;;  %p1531_p8 = scmp.lt.s32.totalorder %s1759_s22, 4 }
   0xc   : > { %s2133_s25 = smov (%p31_p4, %s2131_s25), 0  ;;  %p1839_p7 = por %p50_p5, %p49_p3 }
   0xd   : > { %s33_s28 = ssub.s32 %s1755_s21, %s2133_s25  ;;  %s173_s29 = sand.u32 1, %s1739_s17  }
   0xe   : > { %p34_p9 = scmp.eq.s32.totalorder %s33_s28, 0  ;;  %s1522_s30 = smul.u32 144, %s173_s29 }
   0xf   : > { %p1528_p10 = pnand %p1531_p8, %p45_p6  ;;  %s1523_s6 = smul.u32 144, %s1755_s21 }
  0x10   : > { %s1848_s5 = scalar_select %p34_p9, %s1739_s17, %s36_s26  }
  0x11   : > { %s177_s7 = scalar_lea.vmem [#allocation2], %s1522_s30  ;;  %s182_s11 = scalar_lea.hbm %s2115_s0, %s1523_s6 }
  0x12   : > { %s185_s8 = sshll.u32 %s177_s7, 4  ;;  %s183_s12 = sshll.u32 %s182_s11, 4  ;;  %s186_s8 = int_to_ptr.vmem [resolvable:$true] %s185_s8  ;;  %s184_s12 = int_to_ptr.hbm [resolvable:$true] %s183_s12 }
  0x13   : > { %s174_s13 = scalar_lea.sflag [#allocation3], %s173_s29  ;;  %s1761_s14 = smov 64  }
  0x14   : > { %s1762_s15 = smov 4   ;;  %p1259_p11 = scmp.ge.s32.totalorder %s1759_s22, 1 }
  0x15   : > { %1530 = dma.hbm_to_vmem [thread:$0]  (!%p1528_p10), %s184_s12, 2304, %s186_s8, %s174_s13, %s1761_s14, %s1761_s14, %s1762_s15  }
  0x16   : > { %p193_p12 = scmp.lt.s32.totalorder %s1759_s22, 5 }
  0x18   : > { %p194_p13 = pnand %p1259_p11, %p193_p12 }
  0x19   : > { %s199_s23 = sand.u32 (!%p194_p13), 1, %s1735_s16  }
  0x1a   : > { %197 = sbr.rel (%p194_p13) target bundleno = 472 (0x1d8), region = 36  ;;  %s200_s28 = scalar_lea.sflag (!%p194_p13), [#allocation3], %s199_s23 }
  0x1b   : > { %s1524_s26 = smul.u32 (!%p194_p13), 144, %s199_s23 }
  0x1d   : > { %s203_s30 = scalar_lea.vmem (!%p194_p13), [#allocation2], %s1524_s26 }
  0x1f   : > { %1726 = dma.done.wait (%p1839_p7), %s200_s28, 2304  }
  0x20   : > { %1728 = vsyncadd (%p1839_p7), %s200_s28, 4294964992  ;;  %v1508_v0 = vld [vmem:[%s2116_s1 + $0x28] sm:$0xff]  ;;  %v1496_v1 = vld [vmem:[%s2116_s1 + $0x10] sm:$0xff]  ;;  %s1485_s23 = sshll.u32 %s1743_s18, 6  ;;  %vm355_vm0 = vcmask 392192   ;;  %vm786_vm1 = vcmask 130048  }
  0x21   : > { %v1520_v2 = vld [vmem:[%s2116_s1 + $0x40] sm:$0xff]  ;;  %385 = vmatpush.bf16.msra.mxu0 %v1508_v0  ;;  %516 = vmatpush.bf16.msra.mxu1 %v1496_v1  ;;  %v1495_v4 = vld [vmem:[%s2116_s1 + $0x8] sm:$0xff]  ;;  %v1519_v5 = vld [vmem:[%s2116_s1 + $0x38] sm:$0xff]  ;;  %s1886_s7 = scalar_lea.vmem %s203_s30, %s1485_s23 [#allocation2]  ;;  %s1260_s27 = sshll.u32 %s1743_s18, 4  ;;  %vm1132_vm5 = vcmask 125952  }
  0x22   : > { %v1507_v3 = vld [vmem:[%s2116_s1 + $0x20] sm:$0xff]  ;;  %674 = vmatpush.bf16.msra.mxu2 %v1520_v2  ;;  %v1506_v6 = vld [vmem:[%s2116_s1 + $0x18] sm:$0xff]  ;;  %v1518_v8 = vld [vmem:[%s2116_s1 + $0x30] sm:$0xff]  ;;  %p234_p0 = scmp.lt.s32.totalorder %s1747_s19, 1  ;;  %p236_p1 = scmp.lt.s32.totalorder %s1260_s27, 31 }
  0x23   : > { %v1494_v7 = vld [vmem:[%s2116_s1] sm:$0xff]  ;;  %v1498_v9 = vld [vmem:[%s1886_s7 + $0x8] sm:$0xff]  ;;  %v1510_v11 = vld [vmem:[%s1886_s7 + $0x10] sm:$0xff] }
  0x24   : > { %v1486_v10 = vld [vmem:[%s1886_s7] sm:$0xff]  ;;  %v1499_v12 = vld [vmem:[%s1886_s7 + $0x10] sm:$0xff]  ;;  %v1487_v13 = vld [vmem:[%s1886_s7 + $0x8] sm:$0xff]  ;;  %s2135_s19 = smov (!%p234_p0, %s1747_s19), 1  ;;  %s2137_s27 = smov (!%p236_p1, %s1260_s27), 31 }
  0x25   : > { %386 = vmatpush.bf16.msra.mxu0 %v1507_v3  ;;  %517 = vmatpush.bf16.msra.mxu1 %v1495_v4  ;;  %v1511_v14 = vld [vmem:[%s1886_s7 + $0x18] sm:$0xff]  ;;  %v1488_v16 = vld [vmem:[%s1886_s7 + $0x10] sm:$0xff]  ;;  %v1512_v17 = vld [vmem:[%s1886_s7 + $0x20] sm:$0xff]  ;;  %s1261_s13 = sshll.u32 %s2135_s19, 5 }
  0x26   : > { %675 = vmatpush.bf16.msra.mxu2 %v1519_v5  ;;  %v1500_v15 = vld [vmem:[%s1886_s7 + $0x18] sm:$0xff]  ;;  %v1501_v18 = vld [vmem:[%s1886_s7 + $0x20] sm:$0xff]  ;;  %v1513_v20 = vld [vmem:[%s1886_s7 + $0x28] sm:$0xff]  ;;  %s239_s18 = sadd.s32 %s1261_s13, %s2137_s27 }
  0x27   : > { %v1489_v19 = vld [vmem:[%s1886_s7 + $0x18] sm:$0xff]  ;;  %v1502_v21 = vld [vmem:[%s1886_s7 + $0x28] sm:$0xff]  ;;  %v1490_v22 = vld [vmem:[%s1886_s7 + $0x20] sm:$0xff]  ;;  %s1262_s14 = sshll.u32 %s239_s18, 2 }
  0x28   : > { %v1514_v23 = vld [vmem:[%s1886_s7 + $0x30] sm:$0xff]  ;;  %v1491_v25 = vld [vmem:[%s1886_s7 + $0x28] sm:$0xff]  ;;  %v1515_v26 = vld [vmem:[%s1886_s7 + $0x38] sm:$0xff]  ;;  %s2042_s23 = scalar_lea.vmem %s2119_s4, %s1262_s14 }
  0x29   : > { %387 = vmatpush.bf16.msra.mxu0 %v1506_v6  ;;  %518 = vmatpush.bf16.msra.mxu1 %v1494_v7  ;;  %v1503_v24 = vld [vmem:[%s1886_s7 + $0x30] sm:$0xff]  ;;  %v1504_v27 = vld [vmem:[%s1886_s7 + $0x38] sm:$0xff]  ;;  %v1516_v29 = vld [vmem:[%s1886_s7 + $0x40] sm:$0xff] }
  0x2a   : > { %676 = vmatpush.bf16.msra.mxu2 %v1518_v8  ;;  %v1492_v28 = vld [vmem:[%s1886_s7 + $0x30] sm:$0xff]  ;;  %v1505_v30 = vld [vmem:[%s1886_s7 + $0x40] sm:$0xff]  ;;  %v1493_v31 = vld [vmem:[%s1886_s7 + $0x38] sm:$0xff] }
  0x2b   : > { %v1517_v32 = vld [vmem:[%s1886_s7 + $0x48] sm:$0xff]  ;;  %v1521_v33 = vld [vmem:[%s2118_s3] sm:$0xff] }
  0x2c   : > { %1334 = vmatmul.msk.bf16.vlgmr.msra.gmra.mxu0 %vm355_vm0, %v1498_v9  ;;  %1386 = vmatmul.msk.bf16.vlgmr.msra.gmra.mxu1 %vm355_vm0, %v1486_v10  ;;  %v1945_v41 = vld [vmem:[%s2117_s2] ss:$0 sm:$0xff] }
  0x2d   : > { %1462 = vmatmul.msk.bf16.vlgmr.msra.gmra.mxu2 %vm355_vm0, %v1510_v11  ;;  %818 = vmatpush.bf16.msra.mxu3 %v1521_v33 }
  0x3c   : > { %1335 = vmatmul.msk.bf16.gmra.mxu0 %vm355_vm0, %v1499_v12  ;;  %1387 = vmatmul.msk.bf16.gmra.mxu1 %vm355_vm0, %v1487_v13 }
  0x3d   : > { %1463 = vmatmul.msk.bf16.gmra.mxu2 %vm355_vm0, %v1511_v14 }
  0x4c   : > { %1336 = vmatmul.msk.bf16.gmra.mxu0 %vm355_vm0, %v1500_v15  ;;  %1388 = vmatmul.msk.bf16.gmra.mxu1 %vm355_vm0, %v1488_v16 }
  0x4d   : > { %1464 = vmatmul.msk.bf16.gmra.mxu2 %vm355_vm0, %v1512_v17 }
  0x5c   : > { %1337 = vmatmul.msk.bf16.gmra.mxu0 %vm355_vm0, %v1501_v18  ;;  %1389 = vmatmul.msk.bf16.gmra.mxu1 %vm355_vm0, %v1489_v19 }
  0x5d   : > { %1465 = vmatmul.msk.bf16.gmra.mxu2 %vm355_vm0, %v1513_v20 }
  0x6c   : > { %1338 = vmatmul.msk.bf16.gmra.mxu0 %vm355_vm0, %v1502_v21  ;;  %1390 = vmatmul.msk.bf16.gmra.mxu1 %vm355_vm0, %v1490_v22 }
  0x6d   : > { %1466 = vmatmul.msk.bf16.gmra.mxu2 %vm355_vm0, %v1514_v23 }
  0x7c   : > { %1339 = vmatmul.msk.bf16.gmra.mxu0 %vm355_vm0, %v1503_v24  ;;  %1391 = vmatmul.msk.bf16.gmra.mxu1 %vm355_vm0, %v1491_v25 }
  0x7d   : > { %1467 = vmatmul.msk.bf16.gmra.mxu2 %vm355_vm0, %v1515_v26 }
  0x8c   : > { %1340 = vmatmul.msk.bf16.gmra.mxu0 %vm355_vm0, %v1504_v27  ;;  %1392 = vmatmul.msk.bf16.gmra.mxu1 %vm355_vm0, %v1492_v28 }
  0x8d   : > { %1468 = vmatmul.msk.bf16.gmra.mxu2 %vm355_vm0, %v1516_v29 }
  0x9c   : > { %1341 = vmatmul.msk.bf16.gmra.mxu0 %vm355_vm0, %v1505_v30  ;;  %1393 = vmatmul.msk.bf16.gmra.mxu1 %vm355_vm0, %v1493_v31 }
  0x9d   : > { %1469 = vmatmul.msk.bf16.gmra.mxu2 %vm355_vm0, %v1517_v32 }
  0xa9   : > { %v389_v34 = vpop.f32.mrf.mxu0  ;;  %v520_v35 = vpop.f32.mrf.mxu1 }
  0xaa   : > { %v521_v37 = vadd.f32 %v520_v35, %v389_v34 }
  0xb0   : > { %v678_v36 = vpop.f32.mrf.mxu2 }
  0xb1   : > { %v391_v38 = vpop.f32.mrf.mxu0  ;;  %v522_v39 = vpop.f32.mrf.mxu1  ;;  %v718_v40 = vadd.f32 %v678_v36, %v521_v37 }
  0xb2   : > { %v523_v42 = vadd.f32 %v522_v39, %v391_v38 }
  0xb3   : > { %v1948_v44 = vadd.f32 %v1945_v41, %v718_v40 }
  0xb5   : > { %v754_v49 = vmul.f32 %v1948_v44, %v1948_v44 }
  0xb8   : > { %v680_v43 = vpop.f32.mrf.mxu2 }
  0xb9   : > { %v719_v45 = vadd.f32 %v680_v43, %v523_v42  ;;  %v394_v46 = vpop.f32.mrf.mxu0  ;;  %v525_v47 = vpop.f32.mrf.mxu1 }
  0xba   : > { %v526_v53 = vadd.f32 %v525_v47, %v394_v46 }
  0xbb   : > { %v1951_v48 = vadd.f32 %v1945_v41, %v719_v45 }
  0xbd   : > { %v755_v50 = vmul.f32 %v1951_v48, %v1951_v48 }
  0xbf   : > { %v770_v51 = vpack.c.bf16 %v755_v50, %v754_v49 }
  0xc0   : > { %v683_v52 = vpop.f32.mrf.mxu2 }
  0xc1   : > { %1474 = vmatmul.msk.bf16.vlgmr.msra.gmra.mxu3 %vm786_vm1, %v770_v51  ;;  %v396_v54 = vpop.f32.mrf.mxu0  ;;  %v527_v55 = vpop.f32.mrf.mxu1  ;;  %v720_v56 = vadd.f32 %v683_v52, %v526_v53 }
  0xc2   : > { %v528_v57 = vadd.f32 %v527_v55, %v396_v54 }
  0xc3   : > { %v1959_v59 = vadd.f32 %v1945_v41, %v720_v56 }
  0xc5   : > { %v756_v0 = vmul.f32 %v1959_v59, %v1959_v59 }
  0xc8   : > { %v685_v58 = vpop.f32.mrf.mxu2 }
  0xc9   : > { %v721_v60 = vadd.f32 %v685_v58, %v528_v57  ;;  %v399_v61 = vpop.f32.mrf.mxu0  ;;  %v530_v62 = vpop.f32.mrf.mxu1 }
  0xca   : > { %v531_v4 = vadd.f32 %v530_v62, %v399_v61 }
  0xcb   : > { %v1962_v63 = vadd.f32 %v1945_v41, %v721_v60 }
  0xcd   : > { %v757_v1 = vmul.f32 %v1962_v63, %v1962_v63 }
  0xcf   : > { %v771_v2 = vpack.c.bf16 %v757_v1, %v756_v0 }
  0xd0   : > { %v688_v3 = vpop.f32.mrf.mxu2 }
  0xd1   : > { %1475 = vmatmul.msk.bf16.gmra.mxu3 %vm786_vm1, %v771_v2  ;;  %v401_v5 = vpop.f32.mrf.mxu0  ;;  %v532_v6 = vpop.f32.mrf.mxu1  ;;  %v722_v7 = vadd.f32 %v688_v3, %v531_v4 }
  0xd2   : > { %v533_v8 = vadd.f32 %v532_v6, %v401_v5 }
  0xd3   : > { %v1970_v10 = vadd.f32 %v1945_v41, %v722_v7 }
  0xd5   : > { %v758_v15 = vmul.f32 %v1970_v10, %v1970_v10 }
  0xd8   : > { %v690_v9 = vpop.f32.mrf.mxu2 }
  0xd9   : > { %v723_v11 = vadd.f32 %v690_v9, %v533_v8  ;;  %v404_v12 = vpop.f32.mrf.mxu0  ;;  %v535_v13 = vpop.f32.mrf.mxu1 }
  0xda   : > { %v536_v19 = vadd.f32 %v535_v13, %v404_v12 }
  0xdb   : > { %v1973_v14 = vadd.f32 %v1945_v41, %v723_v11 }
  0xdd   : > { %v759_v16 = vmul.f32 %v1973_v14, %v1973_v14 }
  0xdf   : > { %v772_v17 = vpack.c.bf16 %v759_v16, %v758_v15 }
  0xe0   : > { %v693_v18 = vpop.f32.mrf.mxu2 }
  0xe1   : > { %1476 = vmatmul.msk.bf16.gmra.mxu3 %vm786_vm1, %v772_v17  ;;  %v406_v20 = vpop.f32.mrf.mxu0  ;;  %v537_v21 = vpop.f32.mrf.mxu1  ;;  %v724_v22 = vadd.f32 %v693_v18, %v536_v19 }
  0xe2   : > { %v538_v23 = vadd.f32 %v537_v21, %v406_v20 }
  0xe3   : > { %v1981_v25 = vadd.f32 %v1945_v41, %v724_v22 }
  0xe5   : > { %v760_v30 = vmul.f32 %v1981_v25, %v1981_v25 }
  0xe8   : > { %v695_v24 = vpop.f32.mrf.mxu2 }
  0xe9   : > { %v725_v26 = vadd.f32 %v695_v24, %v538_v23  ;;  %v409_v27 = vpop.f32.mrf.mxu0  ;;  %v540_v28 = vpop.f32.mrf.mxu1 }
  0xea   : > { %v541_v34 = vadd.f32 %v540_v28, %v409_v27 }
  0xeb   : > { %v1984_v29 = vadd.f32 %v1945_v41, %v725_v26 }
  0xed   : > { %v761_v31 = vmul.f32 %v1984_v29, %v1984_v29 }
  0xef   : > { %v773_v32 = vpack.c.bf16 %v761_v31, %v760_v30 }
  0xf0   : > { %v698_v33 = vpop.f32.mrf.mxu2 }
  0xf1   : > { %1477 = vmatmul.msk.bf16.gmra.mxu3 %vm786_vm1, %v773_v32  ;;  %v411_v35 = vpop.f32.mrf.mxu0  ;;  %v542_v36 = vpop.f32.mrf.mxu1  ;;  %v726_v37 = vadd.f32 %v698_v33, %v541_v34 }
  0xf2   : > { %v543_v38 = vadd.f32 %v542_v36, %v411_v35 }
  0xf3   : > { %v1992_v40 = vadd.f32 %v1945_v41, %v726_v37 }
  0xf5   : > { %v762_v47 = vmul.f32 %v1992_v40, %v1992_v40 }
  0xf8   : > { %v700_v39 = vpop.f32.mrf.mxu2 }
  0xf9   : > { %v727_v42 = vadd.f32 %v700_v39, %v543_v38  ;;  %v414_v43 = vpop.f32.mrf.mxu0  ;;  %v545_v45 = vpop.f32.mrf.mxu1 }
  0xfa   : > { %v546_v52 = vadd.f32 %v545_v45, %v414_v43 }
  0xfb   : > { %v1995_v46 = vadd.f32 %v1945_v41, %v727_v42 }
  0xfd   : > { %v763_v49 = vmul.f32 %v1995_v46, %v1995_v46 }
  0xff   : > { %v774_v50 = vpack.c.bf16 %v763_v49, %v762_v47 }
 0x100   : > { %v703_v51 = vpop.f32.mrf.mxu2 }
 0x101   : > { %1478 = vmatmul.msk.bf16.gmra.mxu3 %vm786_vm1, %v774_v50  ;;  %v416_v53 = vpop.f32.mrf.mxu0  ;;  %v547_v54 = vpop.f32.mrf.mxu1  ;;  %v728_v55 = vadd.f32 %v703_v51, %v546_v52 }
 0x102   : > { %v548_v56 = vadd.f32 %v547_v54, %v416_v53 }
 0x103   : > { %v2003_v58 = vadd.f32 %v1945_v41, %v728_v55 }
 0x105   : > { %v764_v1 = vmul.f32 %v2003_v58, %v2003_v58 }
 0x108   : > { %v705_v57 = vpop.f32.mrf.mxu2 }
 0x109   : > { %v729_v60 = vadd.f32 %v705_v57, %v548_v56  ;;  %v419_v61 = vpop.f32.mrf.mxu0  ;;  %v550_v62 = vpop.f32.mrf.mxu1 }
 0x10a   : > { %v551_v5 = vadd.f32 %v550_v62, %v419_v61 }
 0x10b   : > { %v2006_v0 = vadd.f32 %v1945_v41, %v729_v60 }
 0x10d   : > { %v765_v2 = vmul.f32 %v2006_v0, %v2006_v0 }
 0x10f   : > { %v775_v3 = vpack.c.bf16 %v765_v2, %v764_v1 }
 0x110   : > { %v708_v4 = vpop.f32.mrf.mxu2 }
 0x111   : > { %1479 = vmatmul.msk.bf16.gmra.mxu3 %vm786_vm1, %v775_v3  ;;  %v421_v6 = vpop.f32.mrf.mxu0  ;;  %v552_v7 = vpop.f32.mrf.mxu1  ;;  %v730_v8 = vadd.f32 %v708_v4, %v551_v5 }
 0x112   : > { %v553_v9 = vadd.f32 %v552_v7, %v421_v6 }
 0x113   : > { %v2014_v12 = vadd.f32 %v1945_v41, %v730_v8 }
 0x115   : > { %v766_v18 = vmul.f32 %v2014_v12, %v2014_v12 }
 0x118   : > { %v710_v11 = vpop.f32.mrf.mxu2 }
 0x119   : > { %v731_v13 = vadd.f32 %v710_v11, %v553_v9  ;;  %v424_v15 = vpop.f32.mrf.mxu0  ;;  %v555_v16 = vpop.f32.mrf.mxu1 }
 0x11a   : > { %v556_v22 = vadd.f32 %v555_v16, %v424_v15 }
 0x11b   : > { %v2017_v17 = vadd.f32 %v1945_v41, %v731_v13 }
 0x11d   : > { %v767_v19 = vmul.f32 %v2017_v17, %v2017_v17 }
 0x11f   : > { %v776_v20 = vpack.c.bf16 %v767_v19, %v766_v18 }
 0x120   : > { %v713_v21 = vpop.f32.mrf.mxu2 }
 0x121   : > { %1480 = vmatmul.msk.bf16.gmra.mxu3 %vm786_vm1, %v776_v20  ;;  %v426_v23 = vpop.f32.mrf.mxu0  ;;  %v557_v24 = vpop.f32.mrf.mxu1  ;;  %v732_v26 = vadd.f32 %v713_v21, %v556_v22 }
 0x122   : > { %v558_v27 = vadd.f32 %v557_v24, %v426_v23 }
 0x123   : > { %v2025_v30 = vadd.f32 %v1945_v41, %v732_v26 }
 0x125   : > { %v768_v33 = vmul.f32 %v2025_v30, %v2025_v30 }
 0x128   : > { %v715_v28 = vpop.f32.mrf.mxu2 }
 0x129   : > { %v733_v31 = vadd.f32 %v715_v28, %v558_v27 }
 0x12b   : > { %v2028_v32 = vadd.f32 %v1945_v41, %v733_v31 }
 0x12d   : > { %v769_v34 = vmul.f32 %v2028_v32, %v2028_v32 }
 0x12f   : > { %v777_v35 = vpack.c.bf16 %v769_v34, %v768_v33 }
 0x131   : > { %1481 = vmatmul.msk.bf16.gmra.mxu3 %vm786_vm1, %v777_v35 }
 0x144   : > { %v820_v36 = vpop.f32.mrf.mxu3 }
 0x145   : > { %v908_v37 = vadd.f32 1e-08, %v820_v36  ;;  %v860_v38 = vadd.f32 1.0, %v820_v36 }
 0x147   : > { %1599 = vrsqrt.f32 %v908_v37  ;;  %vm930_vm3 = vweird.f32 %v908_v37 }
 0x148   : > { %1601 = vrcp.f32 %v860_v38 }
 0x14c   : > { %v822_v39 = vpop.f32.mrf.mxu3 }
 0x14d   : > { %v909_v42 = vadd.f32 1e-08, %v822_v39  ;;  %v1600_v41 = vpop.eup %1599  ;;  %v861_v49 = vadd.f32 1.0, %v822_v39 }
 0x14e   : > { %v925_v43 = vmul.f32 %v1600_v41, %v908_v37  ;;  %v1602_v51 = vpop.eup %1601  ;;  %vm931_vm2 = vweird.f32 %v1600_v41 }
 0x14f   : > { %1603 = vrsqrt.f32 %v909_v42  ;;  %v892_v57 = vmul.f32 %v1602_v51, %v820_v36  ;;  %vm932_vm4 = vmor %vm930_vm3, %vm931_vm2  ;;  %vm940_vm7 = vweird.f32 %v909_v42 }
 0x150   : > { %v926_v45 = vmul.f32 %v1600_v41, %v925_v43  ;;  %1605 = vrcp.f32 %v861_v49 }
 0x152   : > { %v927_v47 = vmul.f32 0.5, %v926_v45 }
 0x154   : > { %v825_v50 = vpop.f32.mrf.mxu3  ;;  %v928_v52 = vsub.f32 1.5, %v927_v47 }
 0x155   : > { %v910_v53 = vadd.f32 1e-08, %v825_v50  ;;  %v1604_v54 = vpop.eup %1603  ;;  %v862_v2 = vadd.f32 1.0, %v825_v50 }
 0x156   : > { %v929_v55 = vmul.f32 %v1600_v41, %v928_v52  ;;  %v935_v56 = vmul.f32 %v1604_v54, %v909_v42  ;;  %v1606_v5 = vpop.eup %1605  ;;  %vm941_vm6 = vweird.f32 %v1604_v54 }
 0x157   : > { %1607 = vrsqrt.f32 %v910_v53  ;;  %vm942_vm8 = vmor %vm940_vm7, %vm941_vm6  ;;  %vm950_vm10 = vweird.f32 %v910_v53 }
 0x158   : > { %v933_v60 = vsel %vm932_vm4, %v1600_v41, %v929_v55  ;;  %v936_v61 = vmul.f32 %v1604_v54, %v935_v56  ;;  %1609 = vrcp.f32 %v862_v2 }
 0x159   : > { %v1084_v62 = vmul.f32 %v933_v60, %v892_v57 }
 0x15a   : > { %v937_v1 = vmul.f32 0.5, %v936_v61 }
 0x15b   : > { %v1100_v3 = vmul.f32 %v1084_v62, %v1948_v44  ;;  %v893_v44 = vmul.f32 %v1606_v5, %v822_v39 }
 0x15c   : > { %v827_v4 = vpop.f32.mrf.mxu3  ;;  %v938_v6 = vsub.f32 1.5, %v937_v1 }
 0x15d   : > { %v911_v7 = vadd.f32 1e-08, %v827_v4  ;;  %v1608_v8 = vpop.eup %1607  ;;  %v1116_v9 = vpack.c.bf16 %v1100_v3, %v1100_v3  ;;  %v863_v20 = vadd.f32 1.0, %v827_v4 }
 0x15e   : > { %v939_v11 = vmul.f32 %v1604_v54, %v938_v6  ;;  %v945_v13 = vmul.f32 %v1608_v8, %v910_v53  ;;  %v1610_v23 = vpop.eup %1609  ;;  %vm951_vm9 = vweird.f32 %v1608_v8 }
 0x15f   : > { %1133 = vst.msk [vmem:[%s2042_s23] sm:$0xf] %vm1132_vm5, %v1116_v9  ;;  %1611 = vrsqrt.f32 %v911_v7  ;;  %v894_v34 = vmul.f32 %v1610_v23, %v825_v50  ;;  %vm952_vm11 = vmor %vm950_vm10, %vm951_vm9  ;;  %vm960_vm13 = vweird.f32 %v911_v7 }
 0x160   : > { %v943_v15 = vsel %vm942_vm8, %v1604_v54, %v939_v11  ;;  %v946_v16 = vmul.f32 %v1608_v8, %v945_v13  ;;  %1613 = vrcp.f32 %v863_v20 }
 0x161   : > { %v1085_v18 = vmul.f32 %v943_v15, %v893_v44 }
 0x162   : > { %v947_v19 = vmul.f32 0.5, %v946_v16 }
 0x163   : > { %v1101_v21 = vmul.f32 %v1085_v18, %v1951_v48 }
 0x164   : > { %v830_v22 = vpop.f32.mrf.mxu3  ;;  %v948_v24 = vsub.f32 1.5, %v947_v19 }
 0x165   : > { %v912_v26 = vadd.f32 1e-08, %v830_v22  ;;  %v1612_v27 = vpop.eup %1611  ;;  %v1117_v28 = vpack.c.bf16 %v1101_v21, %v1101_v21  ;;  %v864_v38 = vadd.f32 1.0, %v830_v22 }
 0x166   : > { %v949_v31 = vmul.f32 %v1608_v8, %v948_v24  ;;  %v955_v33 = vmul.f32 %v1612_v27, %v911_v7  ;;  %v1614_v41 = vpop.eup %1613  ;;  %vm961_vm12 = vweird.f32 %v1612_v27 }
 0x167   : > { %1134 = vst.msk [vmem:[%s2042_s23 + $0x4] sm:$0xf] %vm1132_vm5, %v1117_v28  ;;  %1615 = vrsqrt.f32 %v912_v26  ;;  %v895_v52 = vmul.f32 %v1614_v41, %v827_v4  ;;  %vm962_vm14 = vmor %vm960_vm13, %vm961_vm12  ;;  %vm970_vm0 = vweird.f32 %v912_v26 }
 0x168   : > { %v953_v35 = vsel %vm952_vm11, %v1608_v8, %v949_v31  ;;  %v956_v36 = vmul.f32 %v1612_v27, %v955_v33  ;;  %1617 = vrcp.f32 %v864_v38 }
 0x169   : > { %v1086_v48 = vmul.f32 %v953_v35, %v894_v34 }
 0x16a   : > { %v957_v37 = vmul.f32 0.5, %v956_v36 }
 0x16b   : > { %v1102_v39 = vmul.f32 %v1086_v48, %v1959_v59 }
 0x16c   : > { %v832_v42 = vpop.f32.mrf.mxu3  ;;  %v958_v43 = vsub.f32 1.5, %v957_v37 }
 0x16d   : > { %v913_v45 = vadd.f32 1e-08, %v832_v42  ;;  %v1616_v47 = vpop.eup %1615  ;;  %v1118_v49 = vpack.c.bf16 %v1102_v39, %v1102_v39  ;;  %v865_v56 = vadd.f32 1.0, %v832_v42 }
 0x16e   : > { %v959_v51 = vmul.f32 %v1612_v27, %v958_v43  ;;  %v965_v50 = vmul.f32 %v1616_v47, %v912_v26  ;;  %v1618_v61 = vpop.eup %1617  ;;  %vm971_vm15 = vweird.f32 %v1616_v47 }
 0x16f   : > { %1135 = vst.msk [vmem:[%s2042_s23 + $0x8] sm:$0xf] %vm1132_vm5, %v1118_v49  ;;  %1619 = vrsqrt.f32 %v913_v45  ;;  %v896_v6 = vmul.f32 %v1618_v61, %v830_v22  ;;  %vm972_vm1 = vmor %vm970_vm0, %vm971_vm15  ;;  %vm980_vm3 = vweird.f32 %v913_v45 }
 0x170   : > { %v963_v53 = vsel %vm962_vm14, %v1612_v27, %v959_v51  ;;  %v966_v54 = vmul.f32 %v1616_v47, %v965_v50  ;;  %1621 = vrcp.f32 %v865_v56 }
 0x171   : > { %v1087_v59 = vmul.f32 %v963_v53, %v895_v52 }
 0x172   : > { %v967_v55 = vmul.f32 0.5, %v966_v54 }
 0x173   : > { %v1103_v57 = vmul.f32 %v1087_v59, %v1962_v63 }
 0x174   : > { %v835_v60 = vpop.f32.mrf.mxu3  ;;  %v968_v62 = vsub.f32 1.5, %v967_v55 }
 0x175   : > { %v914_v1 = vadd.f32 1e-08, %v835_v60  ;;  %v1620_v2 = vpop.eup %1619  ;;  %v1119_v3 = vpack.c.bf16 %v1103_v57, %v1103_v57  ;;  %v866_v11 = vadd.f32 1.0, %v835_v60 }
 0x176   : > { %v969_v5 = vmul.f32 %v1616_v47, %v968_v62  ;;  %v975_v4 = vmul.f32 %v1620_v2, %v913_v45  ;;  %v1622_v15 = vpop.eup %1621  ;;  %vm981_vm2 = vweird.f32 %v1620_v2 }
 0x177   : > { %1136 = vst.msk [vmem:[%s2042_s23 + $0xc] sm:$0xf] %vm1132_vm5, %v1119_v3  ;;  %1623 = vrsqrt.f32 %v914_v1  ;;  %v897_v23 = vmul.f32 %v1622_v15, %v832_v42  ;;  %vm982_vm4 = vmor %vm980_vm3, %vm981_vm2  ;;  %vm990_vm7 = vweird.f32 %v914_v1 }
 0x178   : > { %v973_v7 = vsel %vm972_vm1, %v1616_v47, %v969_v5  ;;  %v976_v8 = vmul.f32 %v1620_v2, %v975_v4  ;;  %1625 = vrcp.f32 %v866_v11 }
 0x179   : > { %v1088_v63 = vmul.f32 %v973_v7, %v896_v6 }
 0x17a   : > { %v977_v9 = vmul.f32 0.5, %v976_v8 }
 0x17b   : > { %v1104_v13 = vmul.f32 %v1088_v63, %v1970_v10 }
 0x17c   : > { %v837_v44 = vpop.f32.mrf.mxu3  ;;  %v978_v16 = vsub.f32 1.5, %v977_v9 }
 0x17d   : > { %v915_v18 = vadd.f32 1e-08, %v837_v44  ;;  %v1624_v19 = vpop.eup %1623  ;;  %v1120_v20 = vpack.c.bf16 %v1104_v13, %v1104_v13  ;;  %v867_v28 = vadd.f32 1.0, %v837_v44 }
 0x17e   : > { %v979_v21 = vmul.f32 %v1620_v2, %v978_v16  ;;  %v985_v22 = vmul.f32 %v1624_v19, %v914_v1  ;;  %v1626_v34 = vpop.eup %1625  ;;  %vm991_vm6 = vweird.f32 %v1624_v19 }
 0x17f   : > { %1137 = vst.msk [vmem:[%s2042_s23 + $0x10] sm:$0xf] %vm1132_vm5, %v1120_v20  ;;  %1627 = vrsqrt.f32 %v915_v18  ;;  %v898_v42 = vmul.f32 %v1626_v34, %v835_v60  ;;  %vm992_vm8 = vmor %vm990_vm7, %vm991_vm6  ;;  %vm1000_vm10 = vweird.f32 %v915_v18 }
 0x180   : > { %v983_v24 = vsel %vm982_vm4, %v1620_v2, %v979_v21  ;;  %v986_v26 = vmul.f32 %v1624_v19, %v985_v22  ;;  %1629 = vrcp.f32 %v867_v28 }
 0x181   : > { %v1089_v10 = vmul.f32 %v983_v24, %v897_v23 }
 0x182   : > { %v987_v27 = vmul.f32 0.5, %v986_v26 }
 0x183   : > { %v1105_v31 = vmul.f32 %v1089_v10, %v1973_v14 }
 0x184   : > { %v840_v33 = vpop.f32.mrf.mxu3  ;;  %v988_v35 = vsub.f32 1.5, %v987_v27 }
 0x185   : > { %v916_v36 = vadd.f32 1e-08, %v840_v33  ;;  %v1628_v48 = vpop.eup %1627  ;;  %v1121_v37 = vpack.c.bf16 %v1105_v31, %v1105_v31  ;;  %v868_v47 = vadd.f32 1.0, %v840_v33 }
 0x186   : > { %v989_v38 = vmul.f32 %v1624_v19, %v988_v35  ;;  %v995_v39 = vmul.f32 %v1628_v48, %v915_v18  ;;  %v1630_v50 = vpop.eup %1629  ;;  %vm1001_vm9 = vweird.f32 %v1628_v48 }
 0x187   : > { %1138 = vst.msk [vmem:[%s2042_s23 + $0x14] sm:$0xf] %vm1132_vm5, %v1121_v37  ;;  %1631 = vrsqrt.f32 %v916_v36  ;;  %v899_v57 = vmul.f32 %v1630_v50, %v837_v44  ;;  %vm1002_vm11 = vmor %vm1000_vm10, %vm1001_vm9  ;;  %vm1010_vm13 = vweird.f32 %v916_v36 }
 0x188   : > { %v993_v41 = vsel %vm992_vm8, %v1624_v19, %v989_v38  ;;  %v996_v43 = vmul.f32 %v1628_v48, %v995_v39  ;;  %1633 = vrcp.f32 %v868_v47 }
 0x189   : > { %v1090_v14 = vmul.f32 %v993_v41, %v898_v42 }
 0x18a   : > { %v997_v45 = vmul.f32 0.5, %v996_v43 }
 0x18b   : > { %v1106_v49 = vmul.f32 %v1090_v14, %v1981_v25 }
 0x18c   : > { %v842_v51 = vpop.f32.mrf.mxu3  ;;  %v998_v52 = vsub.f32 1.5, %v997_v45 }
 0x18d   : > { %v917_v53 = vadd.f32 1e-08, %v842_v51  ;;  %v1632_v54 = vpop.eup %1631  ;;  %v1122_v59 = vpack.c.bf16 %v1106_v49, %v1106_v49  ;;  %v869_v1 = vadd.f32 1.0, %v842_v51 }
 0x18e   : > { %v999_v55 = vmul.f32 %v1628_v48, %v998_v52  ;;  %v1005_v56 = vmul.f32 %v1632_v54, %v916_v36  ;;  %v1634_v5 = vpop.eup %1633  ;;  %vm1011_vm12 = vweird.f32 %v1632_v54 }
 0x18f   : > { %1139 = vst.msk [vmem:[%s2042_s23 + $0x18] sm:$0xf] %vm1132_vm5, %v1122_v59  ;;  %1635 = vrsqrt.f32 %v917_v53  ;;  %v900_v11 = vmul.f32 %v1634_v5, %v840_v33  ;;  %vm1012_vm14 = vmor %vm1010_vm13, %vm1011_vm12  ;;  %vm1020_vm0 = vweird.f32 %v917_v53 }
 0x190   : > { %v1003_v60 = vsel %vm1002_vm11, %v1628_v48, %v999_v55  ;;  %v1006_v61 = vmul.f32 %v1632_v54, %v1005_v56  ;;  %1637 = vrcp.f32 %v869_v1 }
 0x191   : > { %v1091_v25 = vmul.f32 %v1003_v60, %v899_v57 }
 0x192   : > { %v1007_v62 = vmul.f32 0.5, %v1006_v61 }
 0x193   : > { %v1107_v2 = vmul.f32 %v1091_v25, %v1984_v29 }
 0x194   : > { %v845_v3 = vpop.f32.mrf.mxu3  ;;  %v1008_v4 = vsub.f32 1.5, %v1007_v62 }
 0x195   : > { %v918_v6 = vadd.f32 1e-08, %v845_v3  ;;  %v1636_v7 = vpop.eup %1635  ;;  %v1123_v8 = vpack.c.bf16 %v1107_v2, %v1107_v2  ;;  %v870_v16 = vadd.f32 1.0, %v845_v3 }
 0x196   : > { %v1009_v63 = vmul.f32 %v1632_v54, %v1008_v4  ;;  %v1015_v9 = vmul.f32 %v1636_v7, %v917_v53  ;;  %v1638_v20 = vpop.eup %1637  ;;  %vm1021_vm15 = vweird.f32 %v1636_v7 }
 0x197   : > { %1140 = vst.msk [vmem:[%s2042_s23 + $0x1c] sm:$0xf] %vm1132_vm5, %v1123_v8  ;;  %1639 = vrsqrt.f32 %v918_v6  ;;  %v901_v27 = vmul.f32 %v1638_v20, %v842_v51  ;;  %vm1022_vm1 = vmor %vm1020_vm0, %vm1021_vm15  ;;  %vm1030_vm3 = vweird.f32 %v918_v6 }
 0x198   : > { %v1013_v13 = vsel %vm1012_vm14, %v1632_v54, %v1009_v63  ;;  %v1016_v44 = vmul.f32 %v1636_v7, %v1015_v9  ;;  %1641 = vrcp.f32 %v870_v16 }
 0x199   : > { %v1092_v29 = vmul.f32 %v1013_v13, %v900_v11 }
 0x19a   : > { %v1017_v15 = vmul.f32 0.5, %v1016_v44 }
 0x19b   : > { %v1108_v18 = vmul.f32 %v1092_v29, %v1992_v40 }
 0x19c   : > { %v847_v19 = vpop.f32.mrf.mxu3  ;;  %v1018_v21 = vsub.f32 1.5, %v1017_v15 }
 0x19d   : > { %v919_v22 = vadd.f32 1e-08, %v847_v19  ;;  %v1640_v23 = vpop.eup %1639  ;;  %v1124_v24 = vpack.c.bf16 %v1108_v18, %v1108_v18  ;;  %v871_v34 = vadd.f32 1.0, %v847_v19 }
 0x19e   : > { %v1019_v26 = vmul.f32 %v1636_v7, %v1018_v21  ;;  %v1025_v10 = vmul.f32 %v1640_v23, %v918_v6  ;;  %v1642_v48 = vpop.eup %1641  ;;  %vm1031_vm2 = vweird.f32 %v1640_v23 }
 0x19f   : > { %1141 = vst.msk [vmem:[%s2042_s23 + $0x20] sm:$0xf] %vm1132_vm5, %v1124_v24  ;;  %1643 = vrsqrt.f32 %v919_v22  ;;  %v902_v14 = vmul.f32 %v1642_v48, %v845_v3  ;;  %vm1032_vm4 = vmor %vm1030_vm3, %vm1031_vm2  ;;  %vm1040_vm7 = vweird.f32 %v919_v22 }
 0x1a0   : > { %v1023_v28 = vsel %vm1022_vm1, %v1636_v7, %v1019_v26  ;;  %v1026_v31 = vmul.f32 %v1640_v23, %v1025_v10  ;;  %1645 = vrcp.f32 %v871_v34 }
 0x1a1   : > { %v1093_v40 = vmul.f32 %v1023_v28, %v901_v27 }
 0x1a2   : > { %v1027_v33 = vmul.f32 0.5, %v1026_v31 }
 0x1a3   : > { %v1109_v35 = vmul.f32 %v1093_v40, %v1995_v46 }
 0x1a4   : > { %v850_v36 = vpop.f32.mrf.mxu3  ;;  %v1028_v37 = vsub.f32 1.5, %v1027_v33 }
 0x1a5   : > { %v920_v38 = vadd.f32 1e-08, %v850_v36  ;;  %v1644_v39 = vpop.eup %1643  ;;  %v1125_v42 = vpack.c.bf16 %v1109_v35, %v1109_v35  ;;  %v872_v51 = vadd.f32 1.0, %v850_v36 }
 0x1a6   : > { %v1029_v41 = vmul.f32 %v1640_v23, %v1028_v37  ;;  %v1035_v43 = vmul.f32 %v1644_v39, %v919_v22  ;;  %v1646_v53 = vpop.eup %1645  ;;  %vm1041_vm6 = vweird.f32 %v1644_v39 }
 0x1a7   : > { %1142 = vst.msk [vmem:[%s2042_s23 + $0x24] sm:$0xf] %vm1132_vm5, %v1125_v42  ;;  %1647 = vrsqrt.f32 %v920_v38  ;;  %v903_v61 = vmul.f32 %v1646_v53, %v847_v19  ;;  %vm1042_vm8 = vmor %vm1040_vm7, %vm1041_vm6  ;;  %vm1050_vm10 = vweird.f32 %v920_v38 }
 0x1a8   : > { %v1033_v45 = vsel %vm1032_vm4, %v1640_v23, %v1029_v41  ;;  %v1036_v47 = vmul.f32 %v1644_v39, %v1035_v43  ;;  %1649 = vrcp.f32 %v872_v51 }
 0x1a9   : > { %v1094_v46 = vmul.f32 %v1033_v45, %v902_v14 }
 0x1aa   : > { %v1037_v49 = vmul.f32 0.5, %v1036_v47 }
 0x1ab   : > { %v1110_v50 = vmul.f32 %v1094_v46, %v2003_v58 }
 0x1ac   : > { %v852_v52 = vpop.f32.mrf.mxu3  ;;  %v1038_v54 = vsub.f32 1.5, %v1037_v49 }
 0x1ad   : > { %v921_v59 = vadd.f32 1e-08, %v852_v52  ;;  %v1648_v55 = vpop.eup %1647  ;;  %v1126_v56 = vpack.c.bf16 %v1110_v50, %v1110_v50  ;;  %v873_v2 = vadd.f32 1.0, %v852_v52 }
 0x1ae   : > { %v1039_v57 = vmul.f32 %v1644_v39, %v1038_v54  ;;  %v1045_v60 = vmul.f32 %v1648_v55, %v920_v38  ;;  %v1650_v4 = vpop.eup %1649  ;;  %vm1051_vm9 = vweird.f32 %v1648_v55 }
 0x1af   : > { %1143 = vst.msk [vmem:[%s2042_s23 + $0x28] sm:$0xf] %vm1132_vm5, %v1126_v56  ;;  %1651 = vrsqrt.f32 %v921_v59  ;;  %v904_v13 = vmul.f32 %v1650_v4, %v850_v36  ;;  %vm1052_vm11 = vmor %vm1050_vm10, %vm1051_vm9  ;;  %vm1060_vm13 = vweird.f32 %v921_v59 }
 0x1b0   : > { %v1043_v25 = vsel %vm1042_vm8, %v1644_v39, %v1039_v57  ;;  %v1046_v62 = vmul.f32 %v1648_v55, %v1045_v60  ;;  %1653 = vrcp.f32 %v873_v2 }
 0x1b1   : > { %v1095_v58 = vmul.f32 %v1043_v25, %v903_v61 }
 0x1b2   : > { %v1047_v1 = vmul.f32 0.5, %v1046_v62 }
 0x1b3   : > { %v1111_v3 = vmul.f32 %v1095_v58, %v2006_v0 }
 0x1b4   : > { %v855_v5 = vpop.f32.mrf.mxu3  ;;  %v1048_v6 = vsub.f32 1.5, %v1047_v1 }
 0x1b5   : > { %v922_v7 = vadd.f32 1e-08, %v855_v5  ;;  %v1652_v8 = vpop.eup %1651  ;;  %v1127_v63 = vpack.c.bf16 %v1111_v3, %v1111_v3  ;;  %v874_v16 = vadd.f32 1.0, %v855_v5 }
 0x1b6   : > { %v1049_v9 = vmul.f32 %v1648_v55, %v1048_v6  ;;  %v1055_v11 = vmul.f32 %v1652_v8, %v921_v59  ;;  %v1654_v20 = vpop.eup %1653  ;;  %vm1061_vm12 = vweird.f32 %v1652_v8 }
 0x1b7   : > { %1144 = vst.msk [vmem:[%s2042_s23 + $0x2c] sm:$0xf] %vm1132_vm5, %v1127_v63  ;;  %1655 = vrsqrt.f32 %v922_v7  ;;  %v905_v27 = vmul.f32 %v1654_v20, %v852_v52  ;;  %vm1062_vm14 = vmor %vm1060_vm13, %vm1061_vm12  ;;  %vm1070_vm0 = vweird.f32 %v922_v7 }
 0x1b8   : > { %v1053_v44 = vsel %vm1052_vm11, %v1648_v55, %v1049_v9  ;;  %v1056_v29 = vmul.f32 %v1652_v8, %v1055_v11  ;;  %1657 = vrcp.f32 %v874_v16 }
 0x1b9   : > { %v1096_v0 = vmul.f32 %v1053_v44, %v904_v13 }
 0x1ba   : > { %v1057_v15 = vmul.f32 0.5, %v1056_v29 }
 0x1bb   : > { %v1112_v18 = vmul.f32 %v1096_v0, %v2014_v12 }
 0x1bc   : > { %v857_v19 = vpop.f32.mrf.mxu3  ;;  %v1058_v21 = vsub.f32 1.5, %v1057_v15 }
 0x1bd   : > { %v923_v22 = vadd.f32 1e-08, %v857_v19  ;;  %v1656_v23 = vpop.eup %1655  ;;  %v1128_v24 = vpack.c.bf16 %v1112_v18, %v1112_v18  ;;  %v875_v33 = vadd.f32 1.0, %v857_v19 }
 0x1be   : > { %v1059_v26 = vmul.f32 %v1652_v8, %v1058_v21  ;;  %v1065_v10 = vmul.f32 %v1656_v23, %v922_v7  ;;  %v1658_v35 = vpop.eup %1657  ;;  %vm1071_vm15 = vweird.f32 %v1656_v23 }
 0x1bf   : > { %1145 = vst.msk [vmem:[%s2042_s23 + $0x30] sm:$0xf] %vm1132_vm5, %v1128_v24  ;;  %1659 = vrsqrt.f32 %v923_v22  ;;  %v906_v42 = vmul.f32 %v1658_v35, %v855_v5  ;;  %vm1072_vm1 = vmor %vm1070_vm0, %vm1071_vm15  ;;  %vm1080_vm3 = vweird.f32 %v923_v22 }
 0x1c0   : > { %v1063_v28 = vsel %vm1062_vm14, %v1652_v8, %v1059_v26  ;;  %v1066_v31 = vmul.f32 %v1656_v23, %v1065_v10  ;;  %1661 = vrcp.f32 %v875_v33 }
 0x1c1   : > { %v1097_v12 = vmul.f32 %v1063_v28, %v905_v27 }
 0x1c2   : > { %v1067_v40 = vmul.f32 0.5, %v1066_v31 }
 0x1c3   : > { %v1113_v34 = vmul.f32 %v1097_v12, %v2017_v17 }
 0x1c4   : > { %v1068_v36 = vsub.f32 1.5, %v1067_v40 }
 0x1c5   : > { %v1660_v48 = vpop.eup %1659  ;;  %v1129_v37 = vpack.c.bf16 %v1113_v34, %v1113_v34 }
 0x1c6   : > { %v1069_v38 = vmul.f32 %v1656_v23, %v1068_v36  ;;  %v1075_v39 = vmul.f32 %v1660_v48, %v923_v22  ;;  %v1662_v47 = vpop.eup %1661  ;;  %vm1081_vm2 = vweird.f32 %v1660_v48 }
 0x1c7   : > { %1146 = vst.msk [vmem:[%s2042_s23 + $0x34] sm:$0xf] %vm1132_vm5, %v1129_v37  ;;  %v907_v50 = vmul.f32 %v1662_v47, %v857_v19  ;;  %vm1082_vm4 = vmor %vm1080_vm3, %vm1081_vm2 }
 0x1c8   : > { %v1073_v41 = vsel %vm1072_vm1, %v1656_v23, %v1069_v38  ;;  %v1076_v43 = vmul.f32 %v1660_v48, %v1075_v39 }
 0x1c9   : > { %v1098_v14 = vmul.f32 %v1073_v41, %v906_v42 }
 0x1ca   : > { %v1077_v45 = vmul.f32 0.5, %v1076_v43 }
 0x1cb   : > { %v1114_v17 = vmul.f32 %v1098_v14, %v2025_v30 }
 0x1cc   : > { %v1078_v46 = vsub.f32 1.5, %v1077_v45 }
 0x1cd   : > { %v1130_v49 = vpack.c.bf16 %v1114_v17, %v1114_v17 }
 0x1ce   : > { %v1079_v51 = vmul.f32 %v1660_v48, %v1078_v46 }
 0x1cf   : > { %1147 = vst.msk [vmem:[%s2042_s23 + $0x38] sm:$0xf] %vm1132_vm5, %v1130_v49 }
 0x1d0   : > { %v1083_v52 = vsel %vm1082_vm4, %v1660_v48, %v1079_v51 }
 0x1d1   : > { %v1099_v53 = vmul.f32 %v1083_v52, %v907_v50 }
 0x1d3   : > { %v1115_v54 = vmul.f32 %v1099_v53, %v2028_v32 }
 0x1d5   : > { %v1131_v59 = vpack.c.bf16 %v1115_v54, %v1115_v54 }
 0x1d7   : > { %1148 = vst.msk [vmem:[%s2042_s23 + $0x3c] sm:$0xf] %vm1132_vm5, %v1131_v59 }
 0x1d8 PF: > { %s17_s22 = sadd.s32 1, %s1759_s22   ;;  %s2121_s15 = smov %s1735_s16 }
 0x1d9   : > { %p14_p2 = scmp.ge.s32.totalorder %s17_s22, 6   ;;  %s2122_s16 = smov %s1739_s17 }
 0x1da   : > { %s2123_s17 = smov %s1848_s5  ;;  %s2124_s18 = smov %s1751_s20 }
 0x1db   : > { %s2125_s19 = smov %s1755_s21  ;;  %s2126_s20 = smov %s2129_s24 }
 0x1dc   : > { %s2127_s21 = smov %s2133_s25  ;;  %16 = sbr.rel (!%p14_p2) target bundleno = 5 (0x5), region = 81 }
 0x1e1   :  { %1179 = vsyncpa [#allocation3], 1 }
 0x1e2   :  { %1181 = vsyncpa [#allocation3 + $0x1], 1 }

</bundles_post_ra>
